<compile_context>
chip_gen: v7x
topology: tpu7x:2x2x1
jax: 0.10.0
libtpu: 0.0.40
codegen_flags: <defaults>
</compile_context>

<pallas_src>
import numpy as np
import jax
import jax.numpy as jnp
from jax.experimental import pallas as pl
from jax.experimental.pallas import tpu as pltpu


def _cdiv(a, b):
    return -(-a // b)


def _haar_filters(w, dtype):
    """Column filters of shape (W, W/2).

    P: applied to the row-pair sum   -> LL  (P[2j, j] = P[2j+1, j] = 0.5)
    E: applied to the even rows      -> 'a' term (E[2j, j] = 1), det = 2a - LL.
    Values (0.5, 1.0) are exact in f32/bf16/f16.
    """
    wh = w // 2
    p = np.zeros((w, wh), np.float32)
    e = np.zeros((w, wh), np.float32)
    j = np.arange(wh)
    p[2 * j, j] = 0.5
    p[2 * j + 1, j] = 0.5
    e[2 * j, j] = 1.0
    return jnp.asarray(p, dtype), jnp.asarray(e, dtype)


def _dwt_kernel(x_ref, p_ref, e_ref, out_ref):
    # x_ref  : (TB, H/2, 2W)   row r holds [x[2r, :] | x[2r+1, :]]
    # p_ref  : (W, W/2)        column-pair sum * 0.5
    # e_ref  : (W, W/2)        even-column select
    # out_ref: (2, TB, H/2, W/2)   [0] = LL, [1] = LH + HL + HH
    tb, hh, w2 = x_ref.shape
    w = w2 // 2
    wh = w // 2

    x2 = x_ref[...].reshape(tb * hh, w2)   # merge leading dims (lane dim intact)
    xe = x2[:, :w]                         # even source rows (lane offset 0)
    xo = x2[:, w:]                         # odd source rows
    s = xe + xo                            # vertical low-pass (VPU)

    ll = jnp.dot(s, p_ref[...], preferred_element_type=jnp.float32)
    a = jnp.dot(xe, e_ref[...], preferred_element_type=jnp.float32)
    det = 2.0 * a - ll                     # = 1.5a - 0.5(b + c + d) = LH + HL + HH

    out_ref[0] = ll.reshape(tb, hh, wh).astype(out_ref.dtype)
    out_ref[1] = det.reshape(tb, hh, wh).astype(out_ref.dtype)


def _vmem_capacity_bytes():
    try:
        return int(pltpu.get_tpu_info().vmem_capacity_bytes)
    except Exception:
        return 64 << 20                    # v7x per-TensorCore (smallest current)


def downsamplewave(x, *, target_block_bytes=None, min_grid=8):
    """x: (N, C, H, W) float -> (N, 2C, H//2, W//2) == cat([LL, LH+HL+HH], dim=1)."""
    n, c, h, w = x.shape
    if h % 2 or w % 2:
        raise ValueError("spatial dims must be even for the haar DWT")
    if not jnp.issubdtype(x.dtype, jnp.floating):
        raise TypeError("Downsamplewave kernel requires a floating-point dtype")
    hh, wh = h // 2, w // 2
    dtype = x.dtype
    itemsize = jnp.dtype(dtype).itemsize
    plane_bytes = h * w * itemsize

    # ---- per-generation sizing ---------------------------------------------
    vmem_cap = _vmem_capacity_bytes()
    budget = (vmem_cap * 2) // 3                     # leave headroom for compiler scratch
    if target_block_bytes is None:
        target_block_bytes = (8 << 20) if vmem_cap >= (100 << 20) else (4 << 20)

    p, e = _haar_filters(w, dtype)
    const_bytes = 2 * w * wh * itemsize              # both filters

    # ---- channels per step (TB): no divisibility requirement ----------------
    # VMEM model: 2x input block + 2x output block + 2x both filters
    #           = 3*TB*plane_bytes + 4*const_bytes
    tb_vmem = max(1, (budget - 4 * const_bytes) // (3 * plane_bytes))
    tb_tgt = max(1, target_block_bytes // plane_bytes)
    tb = int(min(c, tb_tgt, tb_vmem))
    min_tiles = min(min_grid, n * c)                 # keep pipeline / both v7x TCs fed
    while tb > 1 and n * _cdiv(c, tb) < min_tiles:
        tb -= 1
    cb = _cdiv(c, tb)                                # ragged last block clipped by Pallas

    in_blk = tb * plane_bytes
    out_blk = 2 * tb * hh * wh * itemsize
    needed = 2 * in_blk + 2 * out_blk + 4 * const_bytes
    vmem_limit = int(min(max(32 << 20, needed + in_blk + out_blk + (4 << 20)), vmem_cap))

    # Free, contiguous view: row r of a plane = [x[2r, :] | x[2r+1, :]].
    x_rows = x.reshape(n, c, hh, 2 * w)

    out = pl.pallas_call(
        _dwt_kernel,
        grid=(n, cb),
        in_specs=[
            pl.BlockSpec((None, tb, hh, 2 * w), lambda i, j: (i, j, 0, 0)),
            pl.BlockSpec((w, wh), lambda i, j: (0, 0)),     # constant -> fetched once
            pl.BlockSpec((w, wh), lambda i, j: (0, 0)),
        ],
        out_specs=pl.BlockSpec((None, 2, tb, hh, wh), lambda i, j: (i, 0, j, 0, 0)),
        out_shape=jax.ShapeDtypeStruct((n, 2, c, hh, wh), dtype),
        compiler_params=pltpu.CompilerParams(
            dimension_semantics=("parallel", "parallel"),
            vmem_limit_bytes=vmem_limit,
        ),
    )(x_rows, p, e)

    # (N, 2, C, hh, wh) row-major is bit-identical to (N, 2C, hh, wh): free view,
    # no extra concat pass over the output.
    return out.reshape(n, 2 * c, hh, wh)


def _reference(x):
    """Pure-JAX reference of haar DWT_2D + cat([LL, LH+HL+HH], dim=1)."""
    a = x[:, :, 0::2, 0::2]
    b_ = x[:, :, 0::2, 1::2]
    cc = x[:, :, 1::2, 0::2]
    d = x[:, :, 1::2, 1::2]
    ll = (a + b_ + cc + d) * 0.5
    lh = ((a + cc) - (b_ + d)) * 0.5
    hl = ((a - cc) + (b_ - d)) * 0.5
    hh = ((a - cc) - (b_ - d)) * 0.5
    return jnp.concatenate([ll, lh + hl + hh], axis=1)


if __name__ == "__main__":
    key = jax.random.PRNGKey(0)
    k1, k2 = jax.random.split(key)

    # Test 1: the canonical small shape.
    N, C, H, W = 2, 4, 16, 16
    x = jax.random.normal(k1, (N, C, H, W), dtype=jnp.float32)
    out = jax.block_until_ready(downsamplewave(x))
    ref = _reference(x)
    assert out.shape == (N, 2 * C, H // 2, W // 2), out.shape
    assert np.allclose(np.asarray(out), np.asarray(ref), atol=1e-5, rtol=1e-5)

    # Test 2: channel count not divisible by TB -> exercises the clipped
    # (ragged) last channel block of the 2-D grid.
    N2, C2 = 2, 5
    x2 = jax.random.normal(k2, (N2, C2, H, W), dtype=jnp.float32)
    out2 = jax.block_until_ready(downsamplewave(x2, min_grid=4))   # -> TB=4, cdiv(5,4)=2
    ref2 = _reference(x2)
    assert out2.shape == (N2, 2 * C2, H // 2, W // 2), out2.shape
    assert np.allclose(np.asarray(out2), np.asarray(ref2), atol=1e-5, rtol=1e-5)

    print("KERNEL_OK")
</pallas_src>

<mosaic_0001>
module attributes {stable_mosaic.version = 11 : i64} {
  func.func @_dwt_kernel(%arg0: i32, %arg1: i32, %arg2: memref<1x1x8x32xf32, #tpu.memory_space<vmem>>, %arg3: memref<16x8xf32, #tpu.memory_space<vmem>>, %arg4: memref<16x8xf32, #tpu.memory_space<vmem>>, %arg5: memref<1x2x1x8x8xf32, #tpu.memory_space<vmem>>) attributes {dimension_semantics = [#tpu.dimension_semantics<parallel>, #tpu.dimension_semantics<parallel>], iteration_bounds = array<i64: 2, 4>, scalar_prefetch = 0 : i64, scratch_operands = 0 : i64, tpu.core_type = #tpu.core_type<tc>, window_params = [{transform_indices = @transform_0, window_bounds = array<i64: 1, 1, 8, 32>}, {pipeline_mode = #tpu.pipeline_mode<synchronous>, transform_indices = @transform_1, window_bounds = array<i64: 16, 8>}, {pipeline_mode = #tpu.pipeline_mode<synchronous>, transform_indices = @transform_2, window_bounds = array<i64: 16, 8>}, {transform_indices = @transform_3, window_bounds = array<i64: 1, 2, 1, 8, 8>}]} {
    %c0 = arith.constant 0 : index
    %c0_0 = arith.constant 0 : index
    %c0_1 = arith.constant 0 : index
    %c0_2 = arith.constant 0 : index
    %0 = vector.load %arg2[%c0, %c0_0, %c0_1, %c0_2] : memref<1x1x8x32xf32, #tpu.memory_space<vmem>>, vector<1x1x8x32xf32>
    %1 = vector.shape_cast %0 : vector<1x1x8x32xf32> to vector<1x8x32xf32>
    %2 = vector.shape_cast %1 : vector<1x8x32xf32> to vector<8x32xf32>
    %3 = vector.extract_strided_slice %2 {offsets = [0, 0], sizes = [8, 16], strides = [1, 1]} : vector<8x32xf32> to vector<8x16xf32>
    %4 = vector.extract_strided_slice %2 {offsets = [0, 16], sizes = [8, 16], strides = [1, 1]} : vector<8x32xf32> to vector<8x16xf32>
    %5 = arith.addf %3, %4 : vector<8x16xf32>
    %c0_3 = arith.constant 0 : index
    %c0_4 = arith.constant 0 : index
    %6 = vector.load %arg3[%c0_3, %c0_4] : memref<16x8xf32, #tpu.memory_space<vmem>>, vector<16x8xf32>
    %cst = arith.constant dense<0.000000e+00> : vector<8x8xf32>
    %7 = tpu.matmul %5, %6, %cst {dimension_numbers = #tpu.dot_dimension_numbers<[1], [0], [0], [1], [0, 0, 1, 1], [], []>} : vector<8x16xf32>, vector<16x8xf32>, vector<8x8xf32> -> vector<8x8xf32>
    %c0_5 = arith.constant 0 : index
    %c0_6 = arith.constant 0 : index
    %8 = vector.load %arg4[%c0_5, %c0_6] : memref<16x8xf32, #tpu.memory_space<vmem>>, vector<16x8xf32>
    %cst_7 = arith.constant dense<0.000000e+00> : vector<8x8xf32>
    %9 = tpu.matmul %3, %8, %cst_7 {dimension_numbers = #tpu.dot_dimension_numbers<[1], [0], [0], [1], [0, 0, 1, 1], [], []>} : vector<8x16xf32>, vector<16x8xf32>, vector<8x8xf32> -> vector<8x8xf32>
    %cst_8 = arith.constant 2.000000e+00 : f32
    %10 = vector.broadcast %cst_8 : f32 to vector<8x8xf32>
    %11 = arith.mulf %10, %9 : vector<8x8xf32>
    %12 = arith.subf %11, %7 : vector<8x8xf32>
    %13 = vector.shape_cast %7 : vector<8x8xf32> to vector<1x8x8xf32>
    %c0_9 = arith.constant 0 : index
    %c0_10 = arith.constant 0 : index
    %c0_11 = arith.constant 0 : index
    %c0_12 = arith.constant 0 : index
    %c0_13 = arith.constant 0 : index
    %14 = vector.load %arg5[%c0_9, %c0_10, %c0_11, %c0_12, %c0_13] : memref<1x2x1x8x8xf32, #tpu.memory_space<vmem>>, vector<1x1x1x8x8xf32>
    %15 = vector.shape_cast %14 : vector<1x1x1x8x8xf32> to vector<1x8x8xf32>
    %16 = vector.shape_cast %13 : vector<1x8x8xf32> to vector<1x1x1x8x8xf32>
    tpu.vector_store %arg5[%c0_9, %c0_10, %c0_11, %c0_12, %c0_13], %16 {strides = array<i32>} : memref<1x2x1x8x8xf32, #tpu.memory_space<vmem>>, vector<1x1x1x8x8xf32>,
    %17 = vector.shape_cast %12 : vector<8x8xf32> to vector<1x8x8xf32>
    %c0_14 = arith.constant 0 : index
    %c1 = arith.constant 1 : index
    %c0_15 = arith.constant 0 : index
    %c0_16 = arith.constant 0 : index
    %c0_17 = arith.constant 0 : index
    %18 = vector.load %arg5[%c0_14, %c1, %c0_15, %c0_16, %c0_17] : memref<1x2x1x8x8xf32, #tpu.memory_space<vmem>>, vector<1x1x1x8x8xf32>
    %19 = vector.shape_cast %18 : vector<1x1x1x8x8xf32> to vector<1x8x8xf32>
    %20 = vector.shape_cast %17 : vector<1x8x8xf32> to vector<1x1x1x8x8xf32>
    tpu.vector_store %arg5[%c0_14, %c1, %c0_15, %c0_16, %c0_17], %20 {strides = array<i32>} : memref<1x2x1x8x8xf32, #tpu.memory_space<vmem>>, vector<1x1x1x8x8xf32>,
    return
  }
  func.func @transform_0(%arg0: i32, %arg1: i32) -> (i32, i32, i32, i32) {
    %c0_i32 = arith.constant 0 : i32
    %c0_i32_0 = arith.constant 0 : i32
    %c0_i32_1 = arith.constant 0 : i32
    return %arg0, %arg1, %c0_i32, %c0_i32_0 : i32, i32, i32, i32
  }
  func.func @transform_1(%arg0: i32, %arg1: i32) -> (i32, i32) {
    %c0_i32 = arith.constant 0 : i32
    %c0_i32_0 = arith.constant 0 : i32
    %c0_i32_1 = arith.constant 0 : i32
    return %c0_i32, %c0_i32_0 : i32, i32
  }
  func.func @transform_2(%arg0: i32, %arg1: i32) -> (i32, i32) {
    %c0_i32 = arith.constant 0 : i32
    %c0_i32_0 = arith.constant 0 : i32
    %c0_i32_1 = arith.constant 0 : i32
    return %c0_i32, %c0_i32_0 : i32, i32
  }
  func.func @transform_3(%arg0: i32, %arg1: i32) -> (i32, i32, i32, i32, i32) {
    %c0_i32 = arith.constant 0 : i32
    %c0_i32_0 = arith.constant 0 : i32
    %c0_i32_1 = arith.constant 0 : i32
    %c0_i32_2 = arith.constant 0 : i32
    return %arg0, %c0_i32, %arg1, %c0_i32_0, %c0_i32_1 : i32, i32, i32, i32, i32
  }
}

</mosaic_0001>

<bundles_post_ra>
// kernel: tpu_custom_call.1
= control target key start
LH: loop header
LB: loop body
LE: loop exit
PB: predicated region body
PF: predicated region fallthrough
CT: control target
= control target key end

     0   :  { %8 = vsyncpa [#allocation3], 0  ;;  %s966_s0 = inlined_call_operand.hbm [shape: f32[2,4,8,32], index: 0, kind: input, shape index: {}]   ;;  %s967_s1 = inlined_call_operand.vmem [shape: f32[16,8], index: 1, kind: input, shape index: {}]   ;;  %s968_s2 = inlined_call_operand.vmem [shape: f32[16,8], index: 2, kind: input, shape index: {}]   ;;  %s969_s3 = inlined_call_operand.hbm [shape: f32[2,2,4,8,8], index: 3, kind: output, shape index: {}]  }
   0x1   :  { %10 = vsyncpa [#allocation3 + $0x1], 0 }
   0x2   :  { %11 = vsyncpa [#allocation4], 0 }
   0x3   :  { %13 = vsyncpa [#allocation4 + $0x1], 0  ;;  %s757_s12 = smov 0   ;;  %s759_s13 = smov 0  }
   0x4   :  { %s761_s14 = smov 0   ;;  %s763_s15 = smov 0  }
   0x5   :  { %s765_s16 = smov 0   ;;  %s767_s17 = smov 0  }
   0x6   :  { %s769_s18 = smov 0   ;;  %s771_s19 = smov 0  }
   0x7 LB: > { %s469_s20 = sadd.s32 4294967295, %s726_s19   ;;  %s470_s21 = sadd.s32 4294967294, %s726_s19   ;;  %s726_s19 = sphi %s771_s19, %s19_s19   ;;  %s722_s18 = sphi %s769_s18, %s986_s18   ;;  %s718_s17 = sphi %s767_s17, %s985_s17   ;;  %s714_s16 = sphi %s765_s16, %s984_s16   ;;  %s710_s15 = sphi %s763_s15, %s983_s15   ;;  %s706_s14 = sphi %s761_s14, %s982_s14   ;;  %s702_s13 = sphi %s759_s13, %s981_s13   ;;  %s698_s12 = sphi %s757_s12, %s980_s12  }
   0x8   : > { %s28_s22 = sadd.s32 1, %s718_s17  ;;  %s31_s23 = sadd.s32 1, %s722_s18 }
   0x9   : > { %p29_p0 = scmp.ge.s32.totalorder %s28_s22, 4  ;;  %s40_s24 = sadd.s32 1, %s706_s14 }
   0xa   : > { %p47_p1 = scmp.ne.s32.totalorder %s706_s14, %s702_s13  ;;  %p48_p2 = scmp.eq.s32.totalorder %s726_s19, 0 }
   0xb   : > { %s988_s22 = smov (%p29_p0, %s28_s22), 0  ;;  %s990_s23 = smov (!%p29_p0, %s31_s23), %s722_s18 }
   0xc   : > { %s36_s25 = ssub.s32 %s718_s17, %s988_s22  ;;  %p810_p3 = por %p48_p2, %p47_p1 }
   0xd   : > { %p33_p4 = scmp.ge.s32.totalorder %s990_s23, 2  ;;  %p53_p5 = scmp.ne.s32.totalorder %s702_s13, %s698_s12 }
   0xe   : > { %p54_p6 = scmp.eq.s32.totalorder %s469_s20, 0  ;;  %p121_p7 = scmp.eq.s32.totalorder %s469_s20, 7 }
   0xf   : > { %s992_s23 = smov (%p33_p4, %s990_s23), 0  ;;  %p127_p10 = scmp.eq.s32.totalorder %s470_s21, 7 }
  0x10   : > { %p818_p8 = por %p54_p6, %p53_p5  ;;  %p822_p9 = por %p121_p7, %p47_p1 }
  0x11   : > { %s35_s29 = ssub.s32 %s722_s18, %s992_s23  ;;  %p828_p12 = por %p127_p10, %p53_p5 }
  0x12   : > { %s973_s28 = scalar_select %p822_p9, 1, 0 }
  0x13   : > { %s37_s30 = sor.u32 %s36_s25, %s35_s29  ;;  %p525_p13 = scmp.lt.s32.totalorder %s726_s19, 8 }
  0x14   : > { %p38_p11 = scmp.eq.s32.totalorder %s37_s30, 0  ;;  %s153_s5 = sand.u32 1, %s706_s14  }
  0x15   : > { %s974_s4 = scalar_select %p828_p12, 1, 0 }
  0x16   : > { %s835_s6 = scalar_select %p38_p11, %s706_s14, %s40_s24  }
  0x17   : > { %s473_s7 = sshll.u32 %s153_s5, 3  ;;  %s474_s8 = sshll.u32 %s722_s18, 2 }
  0x18   : > { %s162_s9 = sadd.s32 %s718_s17, %s474_s8  ;;  %s157_s10 = scalar_lea.vmem [#allocation2], %s473_s7 }
  0x19   : > { %s166_s11 = sshll.u32 %s157_s10, 4  ;;  %s475_s20 = sshll.u32 %s162_s9, 7  ;;  %s839_s11 = int_to_ptr.vmem [resolvable:$true] %s166_s11 }
  0x1a   : > { %s844_s29 = scalar_lea.hbm %s966_s0, %s475_s20  ;;  %p848_p0 = pnand %p525_p13, %p810_p3 }
  0x1b   : > { %s154_s30 = scalar_lea.sflag [#allocation3], %s153_s5  ;;  %s598_s7 = scalar_lea.hbm %s844_s29, 128 }
  0x1c   : > { %p599_p4 = scmp.ne.s32.totalorder %s844_s29, %s598_s7  ;;  %p600_p5 = pneg %p848_p0 }
  0x1d   : > { %s603_s9 = scalar_lea.hbm %s966_s0, 1024  ;;  %p604_p3 = scmp.lt.u32.totalorder %s844_s29, %s966_s0 }
  0x1e   : > { %p601_p6 = pnand %p600_p5, %p599_p4  ;;  %p605_p10 = scmp.lt.u32.totalorder %s603_s9, %s598_s7 }
  0x1f   : > { %p607_p13 = scmp.lt.u32.totalorder %s598_s7, %s844_s29 }
  0x20   : > { %p602_p7 = pneg %p601_p6  ;;  %p606_p11 = por %p605_p10, %p604_p3 }
  0x22   : > { %p608_p1 = por %p607_p13, %p606_p11 }
  0x24   : > { %p609_p2 = pnand %p608_p1, %p602_p7 }
  0x26   : > { %612 = shalt.err (!%p609_p2)
}
  0x27   : > { %s613_s5 = scalar_lea.vmem %s839_s11, 128  ;;  %s728_s21 = smov [#allocation2]  }
  0x28   : > { %p614_p4 = scmp.ne.s32.totalorder %s839_s11, %s613_s5  ;;  %s618_s25 = sshll.u32 %s728_s21, 4  ;;  %s619_s25 = int_to_ptr.vmem [resolvable:$false] %s618_s25 }
  0x29   : > { %s620_s26 = scalar_lea.vmem %s619_s25, 256  ;;  %p621_p9 = scmp.lt.s32.totalorder %s839_s11, %s619_s25 }
  0x2a   : > { %p616_p6 = pnand %p614_p4, %p600_p5  ;;  %p622_p3 = scmp.lt.s32.totalorder %s620_s26, %s613_s5 }
  0x2c   : > { %p617_p12 = pneg %p616_p6  ;;  %p623_p10 = por %p622_p3, %p621_p9 }
  0x2e   : > { %p624_p11 = pnand %p623_p10, %p617_p12 }
  0x30   : > { %627 = shalt.err (!%p624_p11)
}
  0x31   : > { %520 = dma.hbm_to_vmem [thread:$0]  (!%p848_p0), %s844_s29, 128, %s839_s11, %s154_s30  }
  0x32   : > { %p976_p1 = scmp.lt.s32.totalorder %s726_s19, 9  ;;  %p977_p2 = scmp.ge.s32.totalorder %s726_s19, 1 }
  0x34   : > { %p172_p5 = pnand %p977_p2, %p976_p1 }
  0x35   : > { %s884_s7 = sand.u32 (!%p172_p5), 1, %s702_s13  }
  0x36   : > { %175 = sbr.rel (%p172_p5) target bundleno = 412 (0x19c), region = 32  ;;  %s477_s8 = sshll.u32 (!%p172_p5), %s884_s7, 3 }
  0x37   : > { %s178_s9 = scalar_lea.sflag (!%p172_p5), [#allocation3], %s884_s7  ;;  %s181_s10 = scalar_lea.vmem (!%p172_p5), [#allocation2], %s477_s8 }
  0x3d   : > { %689 = dma.done.wait (%p818_p8), %s178_s9, 128  }
  0x3e   : > { %691 = vsyncadd (%p818_p8), %s178_s9, 4294967168  ;;  %v729_v0 = vmov 0.0|0.0   ;;  %vm730_vm0 = vmmov 0   ;;  %v731_v1 = vmov 0.0   ;;  %v204_v2 = vld [vmem:[%s181_s10] sm:$0xff]  ;;  %s732_s20 = smov 112  }
  0x3f   : > { %510 = vmatprep.subr.bf16.mxu1 %v729_v0  ;;  %507 = vmatprep.subr.bf16.mxu0 %v729_v0  ;;  %v286_v3 = vld [vmem:[%s968_s2] sm:$0xff]  ;;  %v287_v4 = vld [vmem:[%s968_s2 + $0x8] sm:$0xff]  ;;  %vm212_vm1 = vcmask 130048   ;;  %s478_s26 = sshll.u32 %s884_s7, 4  ;;  %s483_s8 = sshll.u32 %s714_s16, 3  ;;  %vm362_vm2 = vcmask 64512  }
  0x40   : > { %504 = vmatprep.mubr.msk.f32.mxu1 %vm730_vm0, %v731_v1  ;;  %497 = vmatprep.mubr.msk.f32.mxu0 %vm730_vm0, %v731_v1  ;;  %v511_v5 = vpack.c.bf16 %v287_v4, %v286_v3  ;;  %v210_v6 = vld [vmem:[%s967_s1] sm:$0xff]  ;;  %v211_v7 = vld [vmem:[%s967_s1 + $0x8] sm:$0xff]  ;;  %s378_s9 = sadd.s32 %s710_s15, %s483_s8  ;;  %s203_s10 = scalar_lea.vmem [#allocation5], %s478_s26 }
  0x41   : > { %206 = vrot.lane.b32.xlu0 %v204_v2, %s732_s20  ;;  %v508_v8 = vpack.c.bf16 %v211_v7, %v210_v6  ;;  %s381_s11 = sshll.u32 %s203_s10, 4  ;;  %s484_s29 = sshll.u32 %s378_s9, 7  ;;  %s907_s11 = int_to_ptr.vmem [resolvable:$true] %s381_s11 }
  0x42   : > { %512 = vmatpush3.bf16.msra.mxu1 %v511_v5  ;;  %s912_s20 = scalar_lea.hbm %s969_s3, %s484_s29  ;;  %s367_s15 = scalar_lea.sflag [#allocation4], %s884_s7 }
  0x43   : > { %509 = vmatpush3.bf16.msra.mxu0 %v508_v8  ;;  %s628_s16 = scalar_lea.vmem %s907_s11, 256  ;;  %p978_p9 = scmp.ne.s32.totalorder %s973_s28, 0 }
  0x44   : > { %p629_p8 = scmp.ne.s32.totalorder %s907_s11, %s628_s16  ;;  %s733_s27 = smov [#allocation5]  }
  0x45   : > { %505 = vmatmul.mubr.msk.f32.vlgmr.msra.gmra.mrb[0].mxu1 %vm212_vm1, %v204_v2  ;;  %s632_s5 = sshll.u32 %s733_s27, 4  ;;  %s633_s5 = int_to_ptr.vmem [resolvable:$false] %s632_s5 }
  0x46   : > { %p630_p12 = pnand %p629_p8, %p978_p9  ;;  %s634_s21 = scalar_lea.vmem %s633_s5, 512 }
  0x47   : > { %p635_p7 = scmp.lt.s32.totalorder %s907_s11, %s633_s5  ;;  %p636_p13 = scmp.lt.s32.totalorder %s634_s21, %s628_s16 }
  0x48   : > { %p631_p0 = pneg %p630_p12 }
  0x49   : > { %p637_p4 = por %p636_p13, %p635_p7 }
  0x4b   : > { %p638_p6 = pnand %p637_p4, %p631_p0 }
  0xb3   : > { %v207_v9 = vpop.permute.xlu0 %206 }
  0xb4   : > { %v209_v10 = vadd.f32 %v207_v9, %v204_v2 }
  0xb6   : > { %498 = vmatmul.mubr.msk.f32.vlgmr.msra.gmra.mrb[0].mxu0 %vm212_vm1, %v209_v10 }
 0x118   : > { %v356_v11 = vpop.f32.mrb[0].mxu1 }
 0x119   : > { %v506_v12 = vpop.f32.mrb[1].mxu1  ;;  %v360_v13 = vmul.f32 2.0, %v356_v11 }
 0x189   : > { %v282_v14 = vpop.f32.mrb[0].mxu0 }
 0x18a   : > { %v361_v15 = vsub.f32 %v360_v13, %v282_v14  ;;  %363 = vst.msk [vmem:[%s203_s10] sm:$0xff] %vm362_vm2, %v282_v14  ;;  %v499_v16 = vpop.f32.mrb[1].mxu0 }
 0x18c   : > { %481 = vst.msk [vmem:[%s203_s10 + $0x8] sm:$0xff] %vm362_vm2, %v361_v15 }
 0x18d   : > { %641 = shalt.err (!%p638_p6)
}
 0x18e   : > { %s642_s25 = scalar_lea.hbm %s912_s20, 256  ;;  %s646_s9 = scalar_lea.hbm %s969_s3, 2048 }
 0x18f   : > { %p643_p3 = scmp.ne.s32.totalorder %s912_s20, %s642_s25  ;;  %p647_p1 = scmp.lt.u32.totalorder %s912_s20, %s969_s3 }
 0x190   : > { %p648_p2 = scmp.lt.u32.totalorder %s646_s9, %s642_s25  ;;  %p650_p8 = scmp.lt.u32.totalorder %s642_s25, %s912_s20 }
 0x191   : > { %p644_p10 = pnand %p643_p3, %p978_p9 }
 0x192   : > { %p649_p5 = por %p648_p2, %p647_p1 }
 0x193   : > { %p645_p11 = pneg %p644_p10 }
 0x194   : > { %p651_p12 = por %p650_p8, %p649_p5 }
 0x196   : > { %p652_p0 = pnand %p651_p12, %p645_p11 }
 0x198   : > { %655 = shalt.err (!%p652_p0)
}
 0x199   : > { %s734_s24 = smov 128   ;;  %s735_s30 = smov 512  }
 0x19a   : > { %s736_s16 = smov 8  }
 0x19b   : > { %515 = dma.vmem_to_hbm [thread:$0]  (%p978_p9), %s907_s11, 256, %s912_s20, %s367_s15, %s734_s24, %s735_s30, %s736_s16  }
 0x19c PF: > { %p526_p7 = scmp.ge.s32.totalorder %s726_s19, 2  ;;  %s396_s27 = sand.u32 1, %s698_s12  }
 0x19d   : > { %p979_p13 = scmp.ne.s32.totalorder %s974_s4, 0  ;;  %s397_s5 = scalar_lea.sflag [#allocation4], %s396_s27 }
 0x19f   : > { %p522_p4 = pnand %p526_p7, %p979_p13 }
 0x1a1   : > { %693 = dma.done.wait (!%p522_p4), %s397_s5, 256  }
 0x1a2   : > { %695 = vsyncadd (!%p522_p4), %s397_s5, 4294967040  ;;  %s19_s19 = sadd.s32 1, %s726_s19   ;;  %s980_s12 = smov %s702_s13 }
 0x1a3   : > { %p16_p6 = scmp.ge.s32.totalorder %s19_s19, 10   ;;  %s981_s13 = smov %s706_s14 }
 0x1a4   : > { %s982_s14 = smov %s835_s6  ;;  %s983_s15 = smov %s718_s17 }
 0x1a5   : > { %s984_s16 = smov %s722_s18  ;;  %s985_s17 = smov %s988_s22 }
 0x1a6   : > { %s986_s18 = smov %s992_s23  ;;  %18 = sbr.rel (!%p16_p6) target bundleno = 7 (0x7), region = 78 }
 0x1ad   :  { %402 = vsyncpa [#allocation3], 1 }
 0x1ae   :  { %404 = vsyncpa [#allocation3 + $0x1], 1 }
 0x1af   :  { %405 = vsyncpa [#allocation4], 1 }
 0x1b0   :  { %407 = vsyncpa [#allocation4 + $0x1], 1 }

</bundles_post_ra>
